<compile_context>
chip_gen: v6e
topology: v6e:2x2x1
jax: 0.10.0
libtpu: 0.0.40
codegen_flags: <defaults>
</compile_context>

<pallas_src>
import jax
import jax.numpy as jnp
import numpy as np
from jax.experimental import pallas as pl
from jax.experimental.pallas import tpu as pltpu

# Small, deterministic hyperparameters consistent with the module's __init__.
VOCAB_SIZE = 100
EMBEDDING_DIM = 32
HIDDEN_DIM = 32
OUTPUT_DIM = 8
N_LAYERS = 2
SEQ_LEN = 8
BATCH = 2
OUT_PAD = 128  # lane-dense padded output width (multiple of 128)


def lstm_wavefront_kernel(ids_ref, tabp_ref, b0_ref, b1_ref, wc_ref,
                          wfc_ref, bfc_ref, out_ref):
    """Fused embedding gather + wavefront-scheduled 2-layer LSTM + final Linear."""
    H, B, S = HIDDEN_DIM, BATCH, SEQ_LEN
    H2, H8 = 2 * H, 8 * H

    # ---- Fused embedding gather + layer-0 input projection: ONE one-hot matmul ----
    # ids_ref: (S*B, 1) int32 time-major token ids; tabp_ref: (VOCAB, 8H) pre-projected
    # vocabulary (embedding @ w_ih_0 in the interleaved gate layout, layer-1 cols = 0).
    # TODO(synk): for large vocabularies replace the one-hot matmul with a DMA/dynamic-
    # slice gather; at VOCAB=100 the one-hot dot is the cheapest, most robust form.
    ids = ids_ref[...]                                                    # (S*B, 1)
    onehot = (ids == jax.lax.broadcasted_iota(jnp.int32, (S * B, VOCAB_SIZE), 1)
              ).astype(jnp.float32)                                       # (S*B, VOCAB)
    x0 = jnp.dot(onehot, tabp_ref[...],
                 preferred_element_type=jnp.float32) + b0_ref[...]        # (S*B, 8H)
    # Pre-split per-timestep addends before the recurrence so the sublane extracts sit
    # off the serial dependency chain.
    x0_t = [x0[w * B:(w + 1) * B, :] for w in range(S)]

    # Hoist weight load and bias broadcast out of the unrolled recurrence.
    wc = wc_ref[...]                                                      # (2H, 8H)
    b1_b = jnp.broadcast_to(b1_ref[...], (B, H8))                         # (B, 8H)

    def cell(gates, c_prev):
        # Combined two-layer cell over the interleaved layout [i0 i1|f0 f1|g0 g1|o0 o1].
        # One sigmoid push over the full (B, 8H) vreg; tanh(g) via 2*sigmoid(2x)-1
        # (g columns pre-scaled by 2 in param prep) -> only 2 EUP pushes per step.
        sig = jax.nn.sigmoid(gates)
        i_g = sig[:, 0:H2]
        f_g = sig[:, H2:2 * H2]
        g_g = 2.0 * sig[:, 2 * H2:3 * H2] - 1.0
        o_g = sig[:, 3 * H2:4 * H2]
        c_new = f_g * c_prev + i_g * g_g
        h_new = o_g * jnp.tanh(c_new)
        return h_new, c_new

    # Wavefront step 0: both layers' states are zero, so the recurrent dot contributes
    # nothing -> skip it.  x0_t[0]'s layer-1 lanes are exactly 0, hence g1 = tanh(0) = 0
    # and the layer-1 state provably stays zero through this step.
    h, c = cell(x0_t[0], jnp.zeros((B, H2), jnp.float32))                 # h = [h0(0) | 0]

    # Wavefront steps 1..S-1: layer-0 at t=w and layer-1 at t=w-1 share ONE dot.
    # Critical path per step: dot -> add -> sigmoid -> VPU gate math -> tanh -> VPU.
    for w in range(1, S):
        gates = jnp.dot(h, wc, preferred_element_type=jnp.float32) + x0_t[w] + b1_b
        h, c = cell(gates, c)                                             # [h0(w) | h1(w-1)]

    # Final wavefront step (w = S): only layer-1 (time S-1) matters; the layer-0 half of
    # the update is computed-and-discarded, which is cheaper than lane masking.
    gates = jnp.dot(h, wc, preferred_element_type=jnp.float32) + b1_b
    h, _ = cell(gates, c)
    h_top = h[:, H:H2]                                                    # h1(S-1)

    # Final Linear on hidden[-1]; lane-dense (B, 128) store, wrapper slices back.
    out_ref[...] = (jnp.dot(h_top, wfc_ref[...], preferred_element_type=jnp.float32)
                    + bfc_ref[...])


def init_params(key):
    ks = jax.random.split(key, 3 + 3 * N_LAYERS)
    bound = 1.0 / np.sqrt(HIDDEN_DIM)
    params = {}
    params["embedding"] = jax.random.normal(
        ks[0], (VOCAB_SIZE, EMBEDDING_DIM), jnp.float32)
    idx = 1
    for l in range(N_LAYERS):
        in_dim = EMBEDDING_DIM if l == 0 else HIDDEN_DIM
        params[f"w_ih_{l}"] = jax.random.uniform(
            ks[idx], (in_dim, 4 * HIDDEN_DIM), jnp.float32, -bound, bound); idx += 1
        params[f"w_hh_{l}"] = jax.random.uniform(
            ks[idx], (HIDDEN_DIM, 4 * HIDDEN_DIM), jnp.float32, -bound, bound); idx += 1
        # NOTE: real PyTorch nn.LSTM has separate b_ih/b_hh per layer; when importing a
        # checkpoint they must be summed into this single bias.
        params[f"b_{l}"] = jax.random.uniform(
            ks[idx], (1, 4 * HIDDEN_DIM), jnp.float32, -bound, bound); idx += 1
    params["w_fc"] = jax.random.uniform(
        ks[idx], (HIDDEN_DIM, OUTPUT_DIM), jnp.float32, -bound, bound); idx += 1
    params["b_fc"] = jax.random.uniform(
        ks[idx], (1, OUTPUT_DIM), jnp.float32, -bound, bound)
    return params


def prepare_params(params):
    """One-time weight preprocessing, hoisted out of the per-call jitted forward."""
    # TODO(synk): the combined wavefront layout below is specialized to N_LAYERS == 2;
    # generalize by chaining adjacent-layer pairs if deeper stacks are needed.
    assert N_LAYERS == 2
    H, E = HIDDEN_DIM, EMBEDDING_DIM
    z_hh = jnp.zeros((H, H), jnp.float32)
    z_b = jnp.zeros((1, H), jnp.float32)
    z_eh = jnp.zeros((E, H), jnp.float32)

    def gates(w):
        # Split (.., 4H) into PyTorch-ordered [i, f, g, o]; pre-scale g by 2 so the
        # kernel can compute tanh(x) as 2*sigmoid(2x)-1 on the VPU.
        g = [w[..., k * H:(k + 1) * H] for k in range(4)]
        g[2] = 2.0 * g[2]
        return g

    wi0, wh0 = gates(params["w_ih_0"]), gates(params["w_hh_0"])
    wi1, wh1 = gates(params["w_ih_1"]), gates(params["w_hh_1"])
    b0, b1 = gates(params["b_0"]), gates(params["b_1"])

    # Layer-0 input projection in the interleaved layout [i0 i1|f0 f1|g0 g1|o0 o1]
    # (layer-1 columns zero), then pre-project the whole vocabulary through it.
    w0_aug = jnp.concatenate(
        [wi0[0], z_eh, wi0[1], z_eh, wi0[2], z_eh, wi0[3], z_eh], axis=1)   # (E, 8H)
    tab_proj = params["embedding"] @ w0_aug                                  # (VOCAB, 8H)

    b0_aug = jnp.concatenate([b0[0], z_b, b0[1], z_b, b0[2], z_b, b0[3], z_b], axis=1)
    b1_aug = jnp.concatenate([z_b, b1[0], z_b, b1[1], z_b, b1[2], z_b, b1[3]], axis=1)

    # Combined recurrent weight (2H, 8H): rows 0:H multiply h0 (feeding w_hh_0 and
    # w_ih_1), rows H:2H multiply h1 (feeding w_hh_1 only).
    top = jnp.concatenate(
        [wh0[0], wi1[0], wh0[1], wi1[1], wh0[2], wi1[2], wh0[3], wi1[3]], axis=1)
    bot = jnp.concatenate(
        [z_hh, wh1[0], z_hh, wh1[1], z_hh, wh1[2], z_hh, wh1[3]], axis=1)
    w_comb = jnp.concatenate([top, bot], axis=0)                             # (2H, 8H)

    w_fc_pad = jnp.pad(params["w_fc"], ((0, 0), (0, OUT_PAD - OUTPUT_DIM)))
    b_fc_pad = jnp.pad(params["b_fc"], ((0, 0), (0, OUT_PAD - OUTPUT_DIM)))

    return {"tab_proj": tab_proj, "b0_aug": b0_aug, "b1_aug": b1_aug,
            "w_comb": w_comb, "w_fc_pad": w_fc_pad, "b_fc_pad": b_fc_pad}


@jax.jit
def lstm_model_forward(x_ids, prep):
    # Only per-call glue: time-major flatten of the tiny int32 id tensor
    # (row = t*BATCH + b).  The embedding gather itself happens inside the kernel.
    ids_tm = jnp.transpose(x_ids).reshape(-1, 1).astype(jnp.int32)        # (S*B, 1)

    args = [ids_tm, prep["tab_proj"], prep["b0_aug"], prep["b1_aug"],
            prep["w_comb"], prep["w_fc_pad"], prep["b_fc_pad"]]

    def full_spec(a):
        nd = a.ndim
        return pl.BlockSpec(a.shape, lambda *_, nd=nd: (0,) * nd)

    # Whole model in one kernel invocation; total VMEM footprint is ~150 KB, far below
    # scoped limits on v5e/v6e/v7x, so no tiling / multi-buffering is needed.
    # TODO(synk): if BATCH grows, add a leading 'parallel' batch grid axis so v7x's
    # second TensorCore shares the recurrence.
    out_pad = pl.pallas_call(
        lstm_wavefront_kernel,
        out_shape=jax.ShapeDtypeStruct((BATCH, OUT_PAD), jnp.float32),
        grid=(1,),
        in_specs=[full_spec(a) for a in args],
        out_specs=pl.BlockSpec((BATCH, OUT_PAD), lambda i: (0, 0)),
        compiler_params=pltpu.CompilerParams(
            dimension_semantics=("arbitrary",)),
    )(*args)
    return out_pad[:, :OUTPUT_DIM]


def reference_forward(x_ids, params):
    """Pure-JAX reference reproducing PyTorch LSTMModel.forward in eval mode."""
    H = HIDDEN_DIM
    emb = jnp.take(params["embedding"], x_ids, axis=0)  # (B, S, E)
    B = x_ids.shape[0]
    h = [jnp.zeros((B, H), jnp.float32) for _ in range(N_LAYERS)]
    c = [jnp.zeros((B, H), jnp.float32) for _ in range(N_LAYERS)]
    for t in range(SEQ_LEN):
        inp = emb[:, t, :]
        for l in range(N_LAYERS):
            gates = (inp @ params[f"w_ih_{l}"]
                     + h[l] @ params[f"w_hh_{l}"]
                     + params[f"b_{l}"][0])
            i_g = jax.nn.sigmoid(gates[:, :H])
            f_g = jax.nn.sigmoid(gates[:, H:2 * H])
            g_g = jnp.tanh(gates[:, 2 * H:3 * H])
            o_g = jax.nn.sigmoid(gates[:, 3 * H:])
            c[l] = f_g * c[l] + i_g * g_g
            h[l] = o_g * jnp.tanh(c[l])
            inp = h[l]
    return h[-1] @ params["w_fc"] + params["b_fc"][0]


if __name__ == "__main__":
    key = jax.random.PRNGKey(0)
    k_params, k_x = jax.random.split(key)
    params = init_params(k_params)
    x_ids = jax.random.randint(k_x, (BATCH, SEQ_LEN), 0, VOCAB_SIZE, dtype=jnp.int32)

    # One-time parameter preprocessing (hoisted out of the per-call forward).
    prep = jax.tree_util.tree_map(jax.block_until_ready, prepare_params(params))

    out = jax.block_until_ready(lstm_model_forward(x_ids, prep))
    ref = jax.block_until_ready(reference_forward(x_ids, params))
    np.testing.assert_allclose(np.asarray(out), np.asarray(ref), rtol=1e-5, atol=1e-5)

    assert out.shape == (BATCH, OUTPUT_DIM)
    print("KERNEL_OK")
</pallas_src>

<mosaic_0001>
module attributes {stable_mosaic.version = 11 : i64} {
  func.func @lstm_wavefront_kernel(%arg0: i32, %arg1: memref<16x1xi32, #tpu.memory_space<vmem>>, %arg2: memref<100x256xf32, #tpu.memory_space<vmem>>, %arg3: memref<1x256xf32, #tpu.memory_space<vmem>>, %arg4: memref<1x256xf32, #tpu.memory_space<vmem>>, %arg5: memref<64x256xf32, #tpu.memory_space<vmem>>, %arg6: memref<32x128xf32, #tpu.memory_space<vmem>>, %arg7: memref<1x128xf32, #tpu.memory_space<vmem>>, %arg8: memref<2x128xf32, #tpu.memory_space<vmem>>) attributes {dimension_semantics = [#tpu.dimension_semantics<arbitrary>], iteration_bounds = array<i64: 1>, scalar_prefetch = 0 : i64, scratch_operands = 0 : i64, tpu.core_type = #tpu.core_type<tc>, window_params = [{pipeline_mode = #tpu.pipeline_mode<synchronous>, transform_indices = @transform_0, window_bounds = array<i64: 16, 1>}, {pipeline_mode = #tpu.pipeline_mode<synchronous>, transform_indices = @transform_1, window_bounds = array<i64: 100, 256>}, {pipeline_mode = #tpu.pipeline_mode<synchronous>, transform_indices = @transform_2, window_bounds = array<i64: 1, 256>}, {pipeline_mode = #tpu.pipeline_mode<synchronous>, transform_indices = @transform_3, window_bounds = array<i64: 1, 256>}, {pipeline_mode = #tpu.pipeline_mode<synchronous>, transform_indices = @transform_4, window_bounds = array<i64: 64, 256>}, {pipeline_mode = #tpu.pipeline_mode<synchronous>, transform_indices = @transform_5, window_bounds = array<i64: 32, 128>}, {pipeline_mode = #tpu.pipeline_mode<synchronous>, transform_indices = @transform_6, window_bounds = array<i64: 1, 128>}, {pipeline_mode = #tpu.pipeline_mode<synchronous>, transform_indices = @transform_7, window_bounds = array<i64: 2, 128>}]} {
    %c0 = arith.constant 0 : index
    %c0_0 = arith.constant 0 : index
    %0 = vector.load %arg1[%c0, %c0_0] : memref<16x1xi32, #tpu.memory_space<vmem>>, vector<16x1xi32>
    %1 = tpu.iota {dimensions = array<i32: 1>} : vector<16x100xi32>
    %2 = vector.broadcast %0 : vector<16x1xi32> to vector<16x100xi32>
    %3 = arith.cmpi eq, %2, %1 : vector<16x100xi32>
    %4 = arith.extui %3 : vector<16x100xi1> to vector<16x100xi32>
    %5 = arith.sitofp %4 : vector<16x100xi32> to vector<16x100xf32>
    %c0_1 = arith.constant 0 : index
    %c0_2 = arith.constant 0 : index
    %6 = vector.load %arg2[%c0_1, %c0_2] : memref<100x256xf32, #tpu.memory_space<vmem>>, vector<100x256xf32>
    %cst = arith.constant dense<0.000000e+00> : vector<16x256xf32>
    %7 = tpu.matmul %5, %6, %cst {dimension_numbers = #tpu.dot_dimension_numbers<[1], [0], [0], [1], [0, 0, 1, 1], [], []>} : vector<16x100xf32>, vector<100x256xf32>, vector<16x256xf32> -> vector<16x256xf32>
    %c0_3 = arith.constant 0 : index
    %c0_4 = arith.constant 0 : index
    %8 = vector.load %arg3[%c0_3, %c0_4] : memref<1x256xf32, #tpu.memory_space<vmem>>, vector<1x256xf32>
    %9 = vector.broadcast %8 : vector<1x256xf32> to vector<16x256xf32>
    %10 = arith.addf %7, %9 : vector<16x256xf32>
    %11 = vector.extract_strided_slice %10 {offsets = [0, 0], sizes = [2, 256], strides = [1, 1]} : vector<16x256xf32> to vector<2x256xf32>
    %12 = vector.extract_strided_slice %10 {offsets = [2, 0], sizes = [2, 256], strides = [1, 1]} : vector<16x256xf32> to vector<2x256xf32>
    %13 = vector.extract_strided_slice %10 {offsets = [4, 0], sizes = [2, 256], strides = [1, 1]} : vector<16x256xf32> to vector<2x256xf32>
    %14 = vector.extract_strided_slice %10 {offsets = [6, 0], sizes = [2, 256], strides = [1, 1]} : vector<16x256xf32> to vector<2x256xf32>
    %15 = vector.extract_strided_slice %10 {offsets = [8, 0], sizes = [2, 256], strides = [1, 1]} : vector<16x256xf32> to vector<2x256xf32>
    %16 = vector.extract_strided_slice %10 {offsets = [10, 0], sizes = [2, 256], strides = [1, 1]} : vector<16x256xf32> to vector<2x256xf32>
    %17 = vector.extract_strided_slice %10 {offsets = [12, 0], sizes = [2, 256], strides = [1, 1]} : vector<16x256xf32> to vector<2x256xf32>
    %18 = vector.extract_strided_slice %10 {offsets = [14, 0], sizes = [2, 256], strides = [1, 1]} : vector<16x256xf32> to vector<2x256xf32>
    %c0_5 = arith.constant 0 : index
    %c0_6 = arith.constant 0 : index
    %19 = vector.load %arg5[%c0_5, %c0_6] : memref<64x256xf32, #tpu.memory_space<vmem>>, vector<64x256xf32>
    %c0_7 = arith.constant 0 : index
    %c0_8 = arith.constant 0 : index
    %20 = vector.load %arg4[%c0_7, %c0_8] : memref<1x256xf32, #tpu.memory_space<vmem>>, vector<1x256xf32>
    %21 = vector.shape_cast %20 : vector<1x256xf32> to vector<1x256xf32>
    %22 = vector.broadcast %21 : vector<1x256xf32> to vector<2x256xf32>
    %cst_9 = arith.constant 0.000000e+00 : f32
    %23 = vector.broadcast %cst_9 : f32 to vector<2x64xf32>
    %24 = arith.negf %11 : vector<2x256xf32>
    %25 = math.exp %24 : vector<2x256xf32>
    %cst_10 = arith.constant 1.000000e+00 : f32
    %26 = vector.broadcast %cst_10 : f32 to vector<2x256xf32>
    %27 = arith.addf %26, %25 : vector<2x256xf32>
    %28 = arith.divf %26, %27 : vector<2x256xf32>
    %29 = vector.extract_strided_slice %28 {offsets = [0, 0], sizes = [2, 64], strides = [1, 1]} : vector<2x256xf32> to vector<2x64xf32>
    %30 = vector.extract_strided_slice %28 {offsets = [0, 64], sizes = [2, 64], strides = [1, 1]} : vector<2x256xf32> to vector<2x64xf32>
    %31 = vector.extract_strided_slice %28 {offsets = [0, 128], sizes = [2, 64], strides = [1, 1]} : vector<2x256xf32> to vector<2x64xf32>
    %cst_11 = arith.constant 2.000000e+00 : f32
    %32 = vector.broadcast %cst_11 : f32 to vector<2x64xf32>
    %33 = arith.mulf %32, %31 : vector<2x64xf32>
    %cst_12 = arith.constant 1.000000e+00 : f32
    %34 = vector.broadcast %cst_12 : f32 to vector<2x64xf32>
    %35 = arith.subf %33, %34 : vector<2x64xf32>
    %36 = vector.extract_strided_slice %28 {offsets = [0, 192], sizes = [2, 64], strides = [1, 1]} : vector<2x256xf32> to vector<2x64xf32>
    %37 = arith.mulf %30, %23 : vector<2x64xf32>
    %38 = arith.mulf %29, %35 : vector<2x64xf32>
    %39 = arith.addf %37, %38 : vector<2x64xf32>
    %40 = math.tanh %39 : vector<2x64xf32>
    %41 = arith.mulf %36, %40 : vector<2x64xf32>
    %cst_13 = arith.constant dense<0.000000e+00> : vector<2x256xf32>
    %42 = tpu.matmul %41, %19, %cst_13 {dimension_numbers = #tpu.dot_dimension_numbers<[1], [0], [0], [1], [0, 0, 1, 1], [], []>} : vector<2x64xf32>, vector<64x256xf32>, vector<2x256xf32> -> vector<2x256xf32>
    %43 = arith.addf %42, %12 : vector<2x256xf32>
    %44 = arith.addf %43, %22 : vector<2x256xf32>
    %45 = arith.negf %44 : vector<2x256xf32>
    %46 = math.exp %45 : vector<2x256xf32>
    %cst_14 = arith.constant 1.000000e+00 : f32
    %47 = vector.broadcast %cst_14 : f32 to vector<2x256xf32>
    %48 = arith.addf %47, %46 : vector<2x256xf32>
    %49 = arith.divf %47, %48 : vector<2x256xf32>
    %50 = vector.extract_strided_slice %49 {offsets = [0, 0], sizes = [2, 64], strides = [1, 1]} : vector<2x256xf32> to vector<2x64xf32>
    %51 = vector.extract_strided_slice %49 {offsets = [0, 64], sizes = [2, 64], strides = [1, 1]} : vector<2x256xf32> to vector<2x64xf32>
    %52 = vector.extract_strided_slice %49 {offsets = [0, 128], sizes = [2, 64], strides = [1, 1]} : vector<2x256xf32> to vector<2x64xf32>
    %cst_15 = arith.constant 2.000000e+00 : f32
    %53 = vector.broadcast %cst_15 : f32 to vector<2x64xf32>
    %54 = arith.mulf %53, %52 : vector<2x64xf32>
    %cst_16 = arith.constant 1.000000e+00 : f32
    %55 = vector.broadcast %cst_16 : f32 to vector<2x64xf32>
    %56 = arith.subf %54, %55 : vector<2x64xf32>
    %57 = vector.extract_strided_slice %49 {offsets = [0, 192], sizes = [2, 64], strides = [1, 1]} : vector<2x256xf32> to vector<2x64xf32>
    %58 = arith.mulf %51, %39 : vector<2x64xf32>
    %59 = arith.mulf %50, %56 : vector<2x64xf32>
    %60 = arith.addf %58, %59 : vector<2x64xf32>
    %61 = math.tanh %60 : vector<2x64xf32>
    %62 = arith.mulf %57, %61 : vector<2x64xf32>
    %cst_17 = arith.constant dense<0.000000e+00> : vector<2x256xf32>
    %63 = tpu.matmul %62, %19, %cst_17 {dimension_numbers = #tpu.dot_dimension_numbers<[1], [0], [0], [1], [0, 0, 1, 1], [], []>} : vector<2x64xf32>, vector<64x256xf32>, vector<2x256xf32> -> vector<2x256xf32>
    %64 = arith.addf %63, %13 : vector<2x256xf32>
    %65 = arith.addf %64, %22 : vector<2x256xf32>
    %66 = arith.negf %65 : vector<2x256xf32>
    %67 = math.exp %66 : vector<2x256xf32>
    %cst_18 = arith.constant 1.000000e+00 : f32
    %68 = vector.broadcast %cst_18 : f32 to vector<2x256xf32>
    %69 = arith.addf %68, %67 : vector<2x256xf32>
    %70 = arith.divf %68, %69 : vector<2x256xf32>
    %71 = vector.extract_strided_slice %70 {offsets = [0, 0], sizes = [2, 64], strides = [1, 1]} : vector<2x256xf32> to vector<2x64xf32>
    %72 = vector.extract_strided_slice %70 {offsets = [0, 64], sizes = [2, 64], strides = [1, 1]} : vector<2x256xf32> to vector<2x64xf32>
    %73 = vector.extract_strided_slice %70 {offsets = [0, 128], sizes = [2, 64], strides = [1, 1]} : vector<2x256xf32> to vector<2x64xf32>
    %cst_19 = arith.constant 2.000000e+00 : f32
    %74 = vector.broadcast %cst_19 : f32 to vector<2x64xf32>
    %75 = arith.mulf %74, %73 : vector<2x64xf32>
    %cst_20 = arith.constant 1.000000e+00 : f32
    %76 = vector.broadcast %cst_20 : f32 to vector<2x64xf32>
    %77 = arith.subf %75, %76 : vector<2x64xf32>
    %78 = vector.extract_strided_slice %70 {offsets = [0, 192], sizes = [2, 64], strides = [1, 1]} : vector<2x256xf32> to vector<2x64xf32>
    %79 = arith.mulf %72, %60 : vector<2x64xf32>
    %80 = arith.mulf %71, %77 : vector<2x64xf32>
    %81 = arith.addf %79, %80 : vector<2x64xf32>
    %82 = math.tanh %81 : vector<2x64xf32>
    %83 = arith.mulf %78, %82 : vector<2x64xf32>
    %cst_21 = arith.constant dense<0.000000e+00> : vector<2x256xf32>
    %84 = tpu.matmul %83, %19, %cst_21 {dimension_numbers = #tpu.dot_dimension_numbers<[1], [0], [0], [1], [0, 0, 1, 1], [], []>} : vector<2x64xf32>, vector<64x256xf32>, vector<2x256xf32> -> vector<2x256xf32>
    %85 = arith.addf %84, %14 : vector<2x256xf32>
    %86 = arith.addf %85, %22 : vector<2x256xf32>
    %87 = arith.negf %86 : vector<2x256xf32>
    %88 = math.exp %87 : vector<2x256xf32>
    %cst_22 = arith.constant 1.000000e+00 : f32
    %89 = vector.broadcast %cst_22 : f32 to vector<2x256xf32>
    %90 = arith.addf %89, %88 : vector<2x256xf32>
    %91 = arith.divf %89, %90 : vector<2x256xf32>
    %92 = vector.extract_strided_slice %91 {offsets = [0, 0], sizes = [2, 64], strides = [1, 1]} : vector<2x256xf32> to vector<2x64xf32>
    %93 = vector.extract_strided_slice %91 {offsets = [0, 64], sizes = [2, 64], strides = [1, 1]} : vector<2x256xf32> to vector<2x64xf32>
    %94 = vector.extract_strided_slice %91 {offsets = [0, 128], sizes = [2, 64], strides = [1, 1]} : vector<2x256xf32> to vector<2x64xf32>
    %cst_23 = arith.constant 2.000000e+00 : f32
    %95 = vector.broadcast %cst_23 : f32 to vector<2x64xf32>
    %96 = arith.mulf %95, %94 : vector<2x64xf32>
    %cst_24 = arith.constant 1.000000e+00 : f32
    %97 = vector.broadcast %cst_24 : f32 to vector<2x64xf32>
    %98 = arith.subf %96, %97 : vector<2x64xf32>
    %99 = vector.extract_strided_slice %91 {offsets = [0, 192], sizes = [2, 64], strides = [1, 1]} : vector<2x256xf32> to vector<2x64xf32>
    %100 = arith.mulf %93, %81 : vector<2x64xf32>
    %101 = arith.mulf %92, %98 : vector<2x64xf32>
    %102 = arith.addf %100, %101 : vector<2x64xf32>
    %103 = math.tanh %102 : vector<2x64xf32>
    %104 = arith.mulf %99, %103 : vector<2x64xf32>
    %cst_25 = arith.constant dense<0.000000e+00> : vector<2x256xf32>
    %105 = tpu.matmul %104, %19, %cst_25 {dimension_numbers = #tpu.dot_dimension_numbers<[1], [0], [0], [1], [0, 0, 1, 1], [], []>} : vector<2x64xf32>, vector<64x256xf32>, vector<2x256xf32> -> vector<2x256xf32>
    %106 = arith.addf %105, %15 : vector<2x256xf32>
    %107 = arith.addf %106, %22 : vector<2x256xf32>
    %108 = arith.negf %107 : vector<2x256xf32>
    %109 = math.exp %108 : vector<2x256xf32>
    %cst_26 = arith.constant 1.000000e+00 : f32
    %110 = vector.broadcast %cst_26 : f32 to vector<2x256xf32>
    %111 = arith.addf %110, %109 : vector<2x256xf32>
    %112 = arith.divf %110, %111 : vector<2x256xf32>
    %113 = vector.extract_strided_slice %112 {offsets = [0, 0], sizes = [2, 64], strides = [1, 1]} : vector<2x256xf32> to vector<2x64xf32>
    %114 = vector.extract_strided_slice %112 {offsets = [0, 64], sizes = [2, 64], strides = [1, 1]} : vector<2x256xf32> to vector<2x64xf32>
    %115 = vector.extract_strided_slice %112 {offsets = [0, 128], sizes = [2, 64], strides = [1, 1]} : vector<2x256xf32> to vector<2x64xf32>
    %cst_27 = arith.constant 2.000000e+00 : f32
    %116 = vector.broadcast %cst_27 : f32 to vector<2x64xf32>
    %117 = arith.mulf %116, %115 : vector<2x64xf32>
    %cst_28 = arith.constant 1.000000e+00 : f32
    %118 = vector.broadcast %cst_28 : f32 to vector<2x64xf32>
    %119 = arith.subf %117, %118 : vector<2x64xf32>
    %120 = vector.extract_strided_slice %112 {offsets = [0, 192], sizes = [2, 64], strides = [1, 1]} : vector<2x256xf32> to vector<2x64xf32>
    %121 = arith.mulf %114, %102 : vector<2x64xf32>
    %122 = arith.mulf %113, %119 : vector<2x64xf32>
    %123 = arith.addf %121, %122 : vector<2x64xf32>
    %124 = math.tanh %123 : vector<2x64xf32>
    %125 = arith.mulf %120, %124 : vector<2x64xf32>
    %cst_29 = arith.constant dense<0.000000e+00> : vector<2x256xf32>
    %126 = tpu.matmul %125, %19, %cst_29 {dimension_numbers = #tpu.dot_dimension_numbers<[1], [0], [0], [1], [0, 0, 1, 1], [], []>} : vector<2x64xf32>, vector<64x256xf32>, vector<2x256xf32> -> vector<2x256xf32>
    %127 = arith.addf %126, %16 : vector<2x256xf32>
    %128 = arith.addf %127, %22 : vector<2x256xf32>
    %129 = arith.negf %128 : vector<2x256xf32>
    %130 = math.exp %129 : vector<2x256xf32>
    %cst_30 = arith.constant 1.000000e+00 : f32
    %131 = vector.broadcast %cst_30 : f32 to vector<2x256xf32>
    %132 = arith.addf %131, %130 : vector<2x256xf32>
    %133 = arith.divf %131, %132 : vector<2x256xf32>
    %134 = vector.extract_strided_slice %133 {offsets = [0, 0], sizes = [2, 64], strides = [1, 1]} : vector<2x256xf32> to vector<2x64xf32>
    %135 = vector.extract_strided_slice %133 {offsets = [0, 64], sizes = [2, 64], strides = [1, 1]} : vector<2x256xf32> to vector<2x64xf32>
    %136 = vector.extract_strided_slice %133 {offsets = [0, 128], sizes = [2, 64], strides = [1, 1]} : vector<2x256xf32> to vector<2x64xf32>
    %cst_31 = arith.constant 2.000000e+00 : f32
    %137 = vector.broadcast %cst_31 : f32 to vector<2x64xf32>
    %138 = arith.mulf %137, %136 : vector<2x64xf32>
    %cst_32 = arith.constant 1.000000e+00 : f32
    %139 = vector.broadcast %cst_32 : f32 to vector<2x64xf32>
    %140 = arith.subf %138, %139 : vector<2x64xf32>
    %141 = vector.extract_strided_slice %133 {offsets = [0, 192], sizes = [2, 64], strides = [1, 1]} : vector<2x256xf32> to vector<2x64xf32>
    %142 = arith.mulf %135, %123 : vector<2x64xf32>
    %143 = arith.mulf %134, %140 : vector<2x64xf32>
    %144 = arith.addf %142, %143 : vector<2x64xf32>
    %145 = math.tanh %144 : vector<2x64xf32>
    %146 = arith.mulf %141, %145 : vector<2x64xf32>
    %cst_33 = arith.constant dense<0.000000e+00> : vector<2x256xf32>
    %147 = tpu.matmul %146, %19, %cst_33 {dimension_numbers = #tpu.dot_dimension_numbers<[1], [0], [0], [1], [0, 0, 1, 1], [], []>} : vector<2x64xf32>, vector<64x256xf32>, vector<2x256xf32> -> vector<2x256xf32>
    %148 = arith.addf %147, %17 : vector<2x256xf32>
    %149 = arith.addf %148, %22 : vector<2x256xf32>
    %150 = arith.negf %149 : vector<2x256xf32>
    %151 = math.exp %150 : vector<2x256xf32>
    %cst_34 = arith.constant 1.000000e+00 : f32
    %152 = vector.broadcast %cst_34 : f32 to vector<2x256xf32>
    %153 = arith.addf %152, %151 : vector<2x256xf32>
    %154 = arith.divf %152, %153 : vector<2x256xf32>
    %155 = vector.extract_strided_slice %154 {offsets = [0, 0], sizes = [2, 64], strides = [1, 1]} : vector<2x256xf32> to vector<2x64xf32>
    %156 = vector.extract_strided_slice %154 {offsets = [0, 64], sizes = [2, 64], strides = [1, 1]} : vector<2x256xf32> to vector<2x64xf32>
    %157 = vector.extract_strided_slice %154 {offsets = [0, 128], sizes = [2, 64], strides = [1, 1]} : vector<2x256xf32> to vector<2x64xf32>
    %cst_35 = arith.constant 2.000000e+00 : f32
    %158 = vector.broadcast %cst_35 : f32 to vector<2x64xf32>
    %159 = arith.mulf %158, %157 : vector<2x64xf32>
    %cst_36 = arith.constant 1.000000e+00 : f32
    %160 = vector.broadcast %cst_36 : f32 to vector<2x64xf32>
    %161 = arith.subf %159, %160 : vector<2x64xf32>
    %162 = vector.extract_strided_slice %154 {offsets = [0, 192], sizes = [2, 64], strides = [1, 1]} : vector<2x256xf32> to vector<2x64xf32>
    %163 = arith.mulf %156, %144 : vector<2x64xf32>
    %164 = arith.mulf %155, %161 : vector<2x64xf32>
    %165 = arith.addf %163, %164 : vector<2x64xf32>
    %166 = math.tanh %165 : vector<2x64xf32>
    %167 = arith.mulf %162, %166 : vector<2x64xf32>
    %cst_37 = arith.constant dense<0.000000e+00> : vector<2x256xf32>
    %168 = tpu.matmul %167, %19, %cst_37 {dimension_numbers = #tpu.dot_dimension_numbers<[1], [0], [0], [1], [0, 0, 1, 1], [], []>} : vector<2x64xf32>, vector<64x256xf32>, vector<2x256xf32> -> vector<2x256xf32>
    %169 = arith.addf %168, %18 : vector<2x256xf32>
    %170 = arith.addf %169, %22 : vector<2x256xf32>
    %171 = arith.negf %170 : vector<2x256xf32>
    %172 = math.exp %171 : vector<2x256xf32>
    %cst_38 = arith.constant 1.000000e+00 : f32
    %173 = vector.broadcast %cst_38 : f32 to vector<2x256xf32>
    %174 = arith.addf %173, %172 : vector<2x256xf32>
    %175 = arith.divf %173, %174 : vector<2x256xf32>
    %176 = vector.extract_strided_slice %175 {offsets = [0, 0], sizes = [2, 64], strides = [1, 1]} : vector<2x256xf32> to vector<2x64xf32>
    %177 = vector.extract_strided_slice %175 {offsets = [0, 64], sizes = [2, 64], strides = [1, 1]} : vector<2x256xf32> to vector<2x64xf32>
    %178 = vector.extract_strided_slice %175 {offsets = [0, 128], sizes = [2, 64], strides = [1, 1]} : vector<2x256xf32> to vector<2x64xf32>
    %cst_39 = arith.constant 2.000000e+00 : f32
    %179 = vector.broadcast %cst_39 : f32 to vector<2x64xf32>
    %180 = arith.mulf %179, %178 : vector<2x64xf32>
    %cst_40 = arith.constant 1.000000e+00 : f32
    %181 = vector.broadcast %cst_40 : f32 to vector<2x64xf32>
    %182 = arith.subf %180, %181 : vector<2x64xf32>
    %183 = vector.extract_strided_slice %175 {offsets = [0, 192], sizes = [2, 64], strides = [1, 1]} : vector<2x256xf32> to vector<2x64xf32>
    %184 = arith.mulf %177, %165 : vector<2x64xf32>
    %185 = arith.mulf %176, %182 : vector<2x64xf32>
    %186 = arith.addf %184, %185 : vector<2x64xf32>
    %187 = math.tanh %186 : vector<2x64xf32>
    %188 = arith.mulf %183, %187 : vector<2x64xf32>
    %cst_41 = arith.constant dense<0.000000e+00> : vector<2x256xf32>
    %189 = tpu.matmul %188, %19, %cst_41 {dimension_numbers = #tpu.dot_dimension_numbers<[1], [0], [0], [1], [0, 0, 1, 1], [], []>} : vector<2x64xf32>, vector<64x256xf32>, vector<2x256xf32> -> vector<2x256xf32>
    %190 = arith.addf %189, %22 : vector<2x256xf32>
    %191 = arith.negf %190 : vector<2x256xf32>
    %192 = math.exp %191 : vector<2x256xf32>
    %cst_42 = arith.constant 1.000000e+00 : f32
    %193 = vector.broadcast %cst_42 : f32 to vector<2x256xf32>
    %194 = arith.addf %193, %192 : vector<2x256xf32>
    %195 = arith.divf %193, %194 : vector<2x256xf32>
    %196 = vector.extract_strided_slice %195 {offsets = [0, 0], sizes = [2, 64], strides = [1, 1]} : vector<2x256xf32> to vector<2x64xf32>
    %197 = vector.extract_strided_slice %195 {offsets = [0, 64], sizes = [2, 64], strides = [1, 1]} : vector<2x256xf32> to vector<2x64xf32>
    %198 = vector.extract_strided_slice %195 {offsets = [0, 128], sizes = [2, 64], strides = [1, 1]} : vector<2x256xf32> to vector<2x64xf32>
    %cst_43 = arith.constant 2.000000e+00 : f32
    %199 = vector.broadcast %cst_43 : f32 to vector<2x64xf32>
    %200 = arith.mulf %199, %198 : vector<2x64xf32>
    %cst_44 = arith.constant 1.000000e+00 : f32
    %201 = vector.broadcast %cst_44 : f32 to vector<2x64xf32>
    %202 = arith.subf %200, %201 : vector<2x64xf32>
    %203 = vector.extract_strided_slice %195 {offsets = [0, 192], sizes = [2, 64], strides = [1, 1]} : vector<2x256xf32> to vector<2x64xf32>
    %204 = arith.mulf %197, %186 : vector<2x64xf32>
    %205 = arith.mulf %196, %202 : vector<2x64xf32>
    %206 = arith.addf %204, %205 : vector<2x64xf32>
    %207 = math.tanh %206 : vector<2x64xf32>
    %208 = arith.mulf %203, %207 : vector<2x64xf32>
    %209 = vector.extract_strided_slice %208 {offsets = [0, 32], sizes = [2, 32], strides = [1, 1]} : vector<2x64xf32> to vector<2x32xf32>
    %c0_45 = arith.constant 0 : index
    %c0_46 = arith.constant 0 : index
    %210 = vector.load %arg6[%c0_45, %c0_46] : memref<32x128xf32, #tpu.memory_space<vmem>>, vector<32x128xf32>
    %cst_47 = arith.constant dense<0.000000e+00> : vector<2x128xf32>
    %211 = tpu.matmul %209, %210, %cst_47 {dimension_numbers = #tpu.dot_dimension_numbers<[1], [0], [0], [1], [0, 0, 1, 1], [], []>} : vector<2x32xf32>, vector<32x128xf32>, vector<2x128xf32> -> vector<2x128xf32>
    %c0_48 = arith.constant 0 : index
    %c0_49 = arith.constant 0 : index
    %212 = vector.load %arg7[%c0_48, %c0_49] : memref<1x128xf32, #tpu.memory_space<vmem>>, vector<1x128xf32>
    %213 = vector.broadcast %212 : vector<1x128xf32> to vector<2x128xf32>
    %214 = arith.addf %211, %213 : vector<2x128xf32>
    %c0_50 = arith.constant 0 : index
    %c0_51 = arith.constant 0 : index
    %215 = vector.load %arg8[%c0_50, %c0_51] : memref<2x128xf32, #tpu.memory_space<vmem>>, vector<2x128xf32>
    tpu.vector_store %arg8[%c0_50, %c0_51], %214 {strides = array<i32>} : memref<2x128xf32, #tpu.memory_space<vmem>>, vector<2x128xf32>,
    return
  }
  func.func @transform_0(%arg0: i32) -> (i32, i32) {
    %c0_i32 = arith.constant 0 : i32
    %c0_i32_0 = arith.constant 0 : i32
    %c0_i32_1 = arith.constant 0 : i32
    return %c0_i32, %c0_i32_0 : i32, i32
  }
  func.func @transform_1(%arg0: i32) -> (i32, i32) {
    %c0_i32 = arith.constant 0 : i32
    %c0_i32_0 = arith.constant 0 : i32
    %c0_i32_1 = arith.constant 0 : i32
    return %c0_i32, %c0_i32_0 : i32, i32
  }
  func.func @transform_2(%arg0: i32) -> (i32, i32) {
    %c0_i32 = arith.constant 0 : i32
    %c0_i32_0 = arith.constant 0 : i32
    %c0_i32_1 = arith.constant 0 : i32
    return %c0_i32, %c0_i32_0 : i32, i32
  }
  func.func @transform_3(%arg0: i32) -> (i32, i32) {
    %c0_i32 = arith.constant 0 : i32
    %c0_i32_0 = arith.constant 0 : i32
    %c0_i32_1 = arith.constant 0 : i32
    return %c0_i32, %c0_i32_0 : i32, i32
  }
  func.func @transform_4(%arg0: i32) -> (i32, i32) {
    %c0_i32 = arith.constant 0 : i32
    %c0_i32_0 = arith.constant 0 : i32
    %c0_i32_1 = arith.constant 0 : i32
    return %c0_i32, %c0_i32_0 : i32, i32
  }
  func.func @transform_5(%arg0: i32) -> (i32, i32) {
    %c0_i32 = arith.constant 0 : i32
    %c0_i32_0 = arith.constant 0 : i32
    %c0_i32_1 = arith.constant 0 : i32
    return %c0_i32, %c0_i32_0 : i32, i32
  }
  func.func @transform_6(%arg0: i32) -> (i32, i32) {
    %c0_i32 = arith.constant 0 : i32
    %c0_i32_0 = arith.constant 0 : i32
    %c0_i32_1 = arith.constant 0 : i32
    return %c0_i32, %c0_i32_0 : i32, i32
  }
  func.func @transform_7(%arg0: i32) -> (i32, i32) {
    %c0_i32 = arith.constant 0 : i32
    %c0_i32_0 = arith.constant 0 : i32
    %c0_i32_1 = arith.constant 0 : i32
    return %c0_i32, %c0_i32_0 : i32, i32
  }
}

</mosaic_0001>

<bundles_post_ra>
// kernel: lstm_model_forward.1
= control target key start
LH: loop header
LB: loop body
LE: loop exit
PB: predicated region body
PF: predicated region fallthrough
CT: control target
= control target key end

     0   :  { %12 = vsyncpa [#allocation3], 0  ;;  %s1774_s0 = inlined_call_operand.vmem [shape: s32[16,1], index: 0, kind: input, shape index: {}]   ;;  %s1775_s1 = inlined_call_operand.hbm [shape: f32[100,256], index: 1, kind: input, shape index: {}]   ;;  %s1776_s2 = inlined_call_operand.vmem [shape: f32[1,256], index: 2, kind: input, shape index: {}]   ;;  %s1777_s3 = inlined_call_operand.vmem [shape: f32[1,256], index: 3, kind: input, shape index: {}]   ;;  %s1778_s4 = inlined_call_operand.hbm [shape: f32[64,256], index: 4, kind: input, shape index: {}]   ;;  %s1779_s5 = inlined_call_operand.vmem [shape: f32[32,128], index: 5, kind: input, shape index: {}]   ;;  %s1780_s6 = inlined_call_operand.vmem [shape: f32[1,128], index: 6, kind: input, shape index: {}]   ;;  %s1781_s7 = inlined_call_operand.hbm [shape: f32[2,128], index: 7, kind: output, shape index: {}]  }
   0x1   :  { %13 = vsyncpa [#allocation6], 0 }
   0x2   :  { %14 = vsyncpa [#allocation4], 0  ;;  %s1416_s24 = smov [#allocation2]  }
   0x3   :  { %s22_s25 = sshll.u32 %s1416_s24, 4  ;;  %s23_s25 = int_to_ptr.vmem [resolvable:$true] %s22_s25 }
   0x4   :  { %s1358_s26 = scalar_lea.vmem %s23_s25, 3328  ;;  %p1363_p1 = scmp.lt.s32.totalorder %s23_s25, %s23_s25 }
   0x5   :  { %p1359_p0 = scmp.ne.s32.totalorder %s23_s25, %s1358_s26  ;;  %p1364_p2 = scmp.lt.s32.totalorder %s1358_s26, %s1358_s26 }
   0x7   :  { %p1365_p3 = por %p1364_p2, %p1363_p1 }
   0x9   :  { %p1366_p4 = pnand %p1365_p3, %p1359_p0 }
   0xb   :  { %1369 = shalt.err (!%p1366_p4)
}
   0xc   :  { %s1417_s27 = smov 256   ;;  %s1418_s28 = smov 16  }
   0xd   :  { %28 = dma.hbm_to_vmem [thread:$0]  %s1775_s1, 3328, %s23_s25, [#allocation3], %s1417_s27, %s1417_s27, %s1418_s28  }
   0xe   :  { %s1419_s8 = smov [#allocation5]  }
   0xf   :  { %s38_s9 = sshll.u32 %s1419_s8, 4  ;;  %s39_s9 = int_to_ptr.vmem [resolvable:$true] %s38_s9 }
  0x10   :  { %s1378_s10 = scalar_lea.vmem %s39_s9, 2048  ;;  %p1383_p6 = scmp.lt.s32.totalorder %s39_s9, %s39_s9 }
  0x11   :  { %p1379_p5 = scmp.ne.s32.totalorder %s39_s9, %s1378_s10  ;;  %p1384_p7 = scmp.lt.s32.totalorder %s1378_s10, %s1378_s10 }
  0x13   :  { %p1385_p8 = por %p1384_p7, %p1383_p6 }
  0x15   :  { %p1386_p9 = pnand %p1385_p8, %p1379_p5 }
  0x17   :  { %1389 = shalt.err (!%p1386_p9)
}
  0x18   :  { %44 = dma.hbm_to_vmem [thread:$0]  %s1778_s4, 2048, %s39_s9, [#allocation6], %s1417_s27, %s1417_s27, %s1418_s28  }
  0x19   :  { %1410 = dma.done.wait [#allocation3], 3328  }
  0x1a   :  { %1411 = vsyncadd [#allocation3], 4294963968 }
  0x1b   :  { %1412 = dma.done.wait [#allocation6], 2048  }
  0x1c   :  { %1413 = vsyncadd [#allocation6], 4294965248  ;;  %v1420_v0 = vmov 0   ;;  %v1421_v1 = vmov 0.0   ;;  %vm116_vm0 = vcmask 1043456   ;;  %v55_v2 = vld [vmem:[%s1774_s0] sm:$0xff]  ;;  %v57_v29 = vlaneseq }
  0x1d   :  { %1259 = vset.pattern.permute.xlu0 %v1420_v0  ;;  %187 = vmatprep.mubr.f32.mxu0 %v1421_v1  ;;  %v96_v3 = vld [vmem:[#allocation2 + $0xc8] sm:$0xf]  ;;  %v95_v4 = vld [vmem:[#allocation2 + $0xc0] sm:$0xf]  ;;  %v94_v5 = vld [vmem:[#allocation2 + $0xb8] sm:$0xff]  ;;  %vm109_vm1 = vcmask 818176  }
  0x1e   :  { %327 = vmatprep.mubr.f32.mxu1 %v1421_v1  ;;  %60 = vperm.xlu0 %1259, %v55_v2   ;;  %v93_v6 = vld [vmem:[#allocation2 + $0xb0] sm:$0xff]  ;;  %v92_v7 = vld [vmem:[#allocation2 + $0xa8] sm:$0xff]  ;;  %v91_v8 = vld [vmem:[#allocation2 + $0xa0] sm:$0xff]  ;;  %v1477_v30 = vand.u32 127, %v57_v29  ;;  %v1483_v33 = vshrl.u32 %v57_v29, 7  ;;  %vm260_vm3 = vcmask 523264  }
  0x1f   :  { %1192 = vmatprep.subr.msk.mxu0 %vm116_vm0, %v96_v3  ;;  %v90_v9 = vld [vmem:[#allocation2 + $0x98] sm:$0xff]  ;;  %v89_v10 = vld [vmem:[#allocation2 + $0x90] sm:$0xff]  ;;  %v88_v11 = vld [vmem:[#allocation2 + $0x88] sm:$0xff]  ;;  %vm1423_vm5 = vmmov 0   ;;  %s1424_s25 = smov 32   ;;  %vm1100_vm6 = vcmask 261120  }
  0x20   :  { %1193 = vmatpush1.msk.msra.mxu0 %vm116_vm0, %v95_v4  ;;  %v87_v12 = vld [vmem:[#allocation2 + $0x80] sm:$0xff]  ;;  %v86_v13 = vld [vmem:[#allocation2 + $0x78] sm:$0xff]  ;;  %v85_v14 = vld [vmem:[#allocation2 + $0x70] sm:$0xff]  ;;  %v101_v34 = vsub.s32 0, %v1483_v33  ;;  %v105_v36 = vsub.s32 1, %v1483_v33 }
  0x21   :  { %131 = vmatprep.subr.mxu0 %v94_v5  ;;  %v84_v15 = vld [vmem:[#allocation2 + $0x68] sm:$0xff]  ;;  %v83_v16 = vld [vmem:[#allocation2 + $0x60] sm:$0xff]  ;;  %v82_v17 = vld [vmem:[#allocation2 + $0x58] sm:$0xff] }
  0x22   :  { %132 = vmatpush1.msra.mxu0 %v93_v6  ;;  %v81_v18 = vld [vmem:[#allocation2 + $0x50] sm:$0xff]  ;;  %v80_v19 = vld [vmem:[#allocation2 + $0x48] sm:$0xff]  ;;  %v79_v20 = vld [vmem:[#allocation2 + $0x40] sm:$0xff] }
  0x23   :  { %133 = vmatprep.subr.mxu0 %v92_v7  ;;  %v78_v21 = vld [vmem:[#allocation2 + $0x38] sm:$0xff]  ;;  %v77_v22 = vld [vmem:[#allocation2 + $0x30] sm:$0xff]  ;;  %v76_v23 = vld [vmem:[#allocation2 + $0x28] sm:$0xff] }
  0x24   :  { %134 = vmatpush1.msra.mxu0 %v91_v8  ;;  %v75_v24 = vld [vmem:[#allocation2 + $0x20] sm:$0xff]  ;;  %v74_v25 = vld [vmem:[#allocation2 + $0x18] sm:$0xff]  ;;  %v73_v26 = vld [vmem:[#allocation2 + $0x10] sm:$0xff] }
  0x25   :  { %135 = vmatprep.subr.mxu0 %v90_v9  ;;  %v72_v27 = vld [vmem:[#allocation2 + $0x8] sm:$0xff]  ;;  %v71_v28 = vld [vmem:[#allocation2] sm:$0xff]  ;;  %v1511_v56 = vld [vmem:[#allocation5 + $0x68] sm:$0xff] }
  0x26   :  { %136 = vmatpush1.msra.mxu0 %v89_v10  ;;  %v97_v35 = vld [vmem:[%s1776_s2] sm:$0x3]  ;;  %s1422_s2 = smov 64   ;;  %v1507_v54 = vld [vmem:[#allocation5 + $0x78] sm:$0xff]  ;;  %v1514_v57 = vld [vmem:[#allocation5 + $0x60] sm:$0xff] }
  0x27   :  { %137 = vmatprep.subr.mxu0 %v88_v11  ;;  %v1492_v37 = vrot.slane %v97_v35, %v101_v34  ;;  %v1496_v38 = vrot.slane %v97_v35, %v105_v36  ;;  %v1509_v55 = vld [vmem:[#allocation5 + $0x70] sm:$0xff]  ;;  %279 = vmatprep.subr.mxu1 %v1507_v54  ;;  %v1518_v58 = vld [vmem:[#allocation5 + $0x58] sm:$0xff]  ;;  %v1526_v60 = vld [vmem:[#allocation5 + $0x48] sm:$0xff] }
  0x28   :  { %138 = vmatpush1.msra.mxu0 %v87_v12  ;;  %280 = vmatpush1.msra.mxu1 %v1509_v55  ;;  %v1522_v59 = vld [vmem:[#allocation5 + $0x50] sm:$0xff]  ;;  %v1530_v61 = vld [vmem:[#allocation5 + $0x40] sm:$0xff]  ;;  %v1534_v62 = vld [vmem:[#allocation5 + $0x38] sm:$0xff] }
  0x29   :  { %139 = vmatprep.subr.mxu0 %v86_v13  ;;  %281 = vmatprep.subr.mxu1 %v1511_v56  ;;  %v1538_v63 = vld [vmem:[#allocation5 + $0x30] sm:$0xff]  ;;  %v1542_v0 = vld [vmem:[#allocation5 + $0x28] sm:$0xff]  ;;  %v1546_v2 = vld [vmem:[#allocation5 + $0x20] sm:$0xff] }
  0x2a   :  { %140 = vmatpush1.msra.mxu0 %v85_v14  ;;  %282 = vmatpush1.msra.mxu1 %v1514_v57  ;;  %v1550_v3 = vld [vmem:[#allocation5 + $0x18] sm:$0xff]  ;;  %v1554_v4 = vld [vmem:[#allocation5 + $0x10] sm:$0xff]  ;;  %v1558_v5 = vld [vmem:[#allocation5 + $0x8] sm:$0xff] }
  0x2b   :  { %141 = vmatprep.subr.mxu0 %v84_v15  ;;  %283 = vmatprep.subr.mxu1 %v1518_v58  ;;  %v1562_v6 = vld [vmem:[#allocation5] sm:$0xff]  ;;  %v216_v13 = vld [vmem:[%s1777_s3] sm:$0x3] }
  0x2c   :  { %142 = vmatpush1.msra.mxu0 %v83_v16  ;;  %284 = vmatpush1.msra.mxu1 %v1522_v59  ;;  %v1597_v14 = vrot.slane %v216_v13, %v101_v34 }
  0x2d   :  { %143 = vmatprep.subr.mxu0 %v82_v17  ;;  %285 = vmatprep.subr.mxu1 %v1526_v60  ;;  %v1602_v17 = vrot.slane %v216_v13, %v105_v36 }
  0x2e   :  { %144 = vmatpush1.msra.mxu0 %v81_v18  ;;  %286 = vmatpush1.msra.mxu1 %v1530_v61 }
  0x2f   :  { %145 = vmatprep.subr.mxu0 %v80_v19  ;;  %287 = vmatprep.subr.mxu1 %v1534_v62 }
  0x30   :  { %146 = vmatpush1.msra.mxu0 %v79_v20  ;;  %288 = vmatpush1.msra.mxu1 %v1538_v63 }
  0x31   :  { %147 = vmatprep.subr.mxu0 %v78_v21  ;;  %289 = vmatprep.subr.mxu1 %v1542_v0 }
  0x32   :  { %148 = vmatpush1.msra.mxu0 %v77_v22  ;;  %290 = vmatpush1.msra.mxu1 %v1546_v2 }
  0x33   :  { %149 = vmatprep.subr.mxu0 %v76_v23  ;;  %291 = vmatprep.subr.mxu1 %v1550_v3 }
  0x34   :  { %150 = vmatpush1.msra.mxu0 %v75_v24  ;;  %292 = vmatpush1.msra.mxu1 %v1554_v4 }
  0x35   :  { %151 = vmatprep.subr.mxu0 %v74_v25  ;;  %293 = vmatprep.subr.mxu1 %v1558_v5 }
  0x36   :  { %152 = vmatpush1.msra.mxu0 %v73_v26  ;;  %294 = vmatpush1.msra.mxu1 %v1562_v6 }
  0x37   :  { %153 = vmatprep.subr.mxu0 %v72_v27  ;;  %384 = vmatprep.subr.mxu1 %v1507_v54 }
  0x38   :  { %154 = vmatpush1.msra.mxu0 %v71_v28 }
  0x39   :  { %489 = vmatprep.subr.mxu0 %v1507_v54 }
  0x99   :  { %v61_v31 = vpop.permute.xlu0 %60 }
  0x9a   :  { %vm65_vm2 = vcmp.eq.s32.totalorder %v61_v31, %v1477_v30 }
  0x9b   :  { %v1190_v32 = vsel %vm65_vm2, 1.0, %v1421_v1 }
  0x9c   :  { %1194 = vmatmul.mubr.msk.f32.vlgmr.msra.gmra.mxu0 %vm109_vm1, %v1190_v32 }
  0x9d   :  { %193 = vmatprep.mubr.f32.mxu0 %v1421_v1  ;;  %490 = vmatpush1.msra.mxu0 %v1509_v55 }
  0x9e   :  { %491 = vmatprep.subr.mxu0 %v1511_v56 }
  0x9f   :  { %492 = vmatpush1.msra.mxu0 %v1514_v57 }
  0xa0   :  { %493 = vmatprep.subr.mxu0 %v1518_v58 }
  0xa1   :  { %494 = vmatpush1.msra.mxu0 %v1522_v59 }
  0xa2   :  { %495 = vmatprep.subr.mxu0 %v1526_v60 }
  0xa3   :  { %496 = vmatpush1.msra.mxu0 %v1530_v61 }
  0xa4   :  { %497 = vmatprep.subr.mxu0 %v1534_v62 }
  0xa5   :  { %498 = vmatpush1.msra.mxu0 %v1538_v63 }
  0xa6   :  { %499 = vmatprep.subr.mxu0 %v1542_v0 }
  0xa7   :  { %500 = vmatpush1.msra.mxu0 %v1546_v2 }
  0xa8   :  { %501 = vmatprep.subr.mxu0 %v1550_v3 }
  0xa9   :  { %502 = vmatpush1.msra.mxu0 %v1554_v4 }
  0xaa   :  { %503 = vmatprep.subr.mxu0 %v1558_v5 }
  0xab   :  { %504 = vmatpush1.msra.mxu0 %v1562_v6 }
  0xac   :  { %697 = vmatprep.subr.mxu0 %v1507_v54 }
 0x15c   :  { %v189_v39 = vpop.f32.mrf.mxu0 }
 0x15d   :  { %v1499_v40 = vadd.f32 %v189_v39, %v1492_v37 }
 0x15e   :  { %v191_v41 = vpop.f32.mrf.mxu0 }
 0x15f   :  { %v1196_v42 = vmul.f32 -1.442695, %v1499_v40  ;;  %v1503_v43 = vadd.f32 %v191_v41, %v1496_v38  ;;  %v256_v15 = vrot.slane %v1499_v40, 2 }
 0x161   :  { %v1197_v44 = vmul.f32 -1.442695, %v1503_v43  ;;  %1260 = vpow2.f32 %v1196_v42  ;;  %v257_v19 = vrot.slane %v1503_v43, 2 }
 0x163   :  { %1262 = vpow2.f32 %v1197_v44 }
 0x16e   :  { %v1261_v45 = vpop.eup %1260 }
 0x16f   :  { %v234_v48 = vadd.f32 1.0, %v1261_v45  ;;  %v56_v45 = vld [vmem:[%s1774_s0 + $0x8] sm:$0xff] }
 0x170   :  { %v1263_v46 = vpop.eup %1262 }
 0x171   :  { %v235_v47 = vadd.f32 1.0, %v1263_v46 }
 0x173   :  { %1264 = vrcp.f32 %v235_v47 }
 0x174   :  { %1266 = vrcp.f32 %v234_v48 }
 0x180   :  { %v1265_v49 = vpop.eup %1264 }
 0x181   :  { %v240_v50 = vmul.f32 2.0, %v1265_v49  ;;  %v1267_v52 = vpop.eup %1266 }
 0x182   :  { %v242_v7 = vmul.f32 0.0, %v1267_v52 }
 0x183   :  { %v1198_v51 = vadd.f32 -1.0, %v240_v50 }
 0x185   :  { %v243_v53 = vmul.f32 %v1267_v52, %v1198_v51 }
 0x187   :  { %245 = vrot.lane.b32.xlu0 %v243_v53, %s1422_s2 }
 0x1f9   :  { %v246_v8 = vpop.permute.xlu0 %245 }
 0x1fa   :  { %v248_v9 = vadd.f32 %v246_v8, %v242_v7 }
 0x1fc   :  { %1268 = vtanh.f32 %v248_v9 }
 0x209   :  { %v1269_v10 = vpop.eup %1268 }
 0x20a   :  { %v250_v11 = vmul.f32 %v1269_v10, %v1265_v49  ;;  %v362_v49 = vrot.slane %v1499_v40, 4 }
 0x20c   :  { %252 = vrot.lane.b32.xlu1 %v250_v11, %s1422_s2 }
 0x27e   :  { %v253_v12 = vpop.permute.xlu1 %252 }
 0x27f   :  { %1199 = vmatmul.mubr.msk.f32.vlgmr.msra.gmra.mxu1 %vm260_vm3, %v253_v12 }
 0x280   :  { %385 = vmatpush1.msra.mxu1 %v1509_v55  ;;  %432 = vmatprep.mubr.f32.mxu1 %v1421_v1 }
 0x281   :  { %386 = vmatprep.subr.mxu1 %v1511_v56 }
 0x282   :  { %387 = vmatpush1.msra.mxu1 %v1514_v57 }
 0x283   :  { %388 = vmatprep.subr.mxu1 %v1518_v58 }
 0x284   :  { %389 = vmatpush1.msra.mxu1 %v1522_v59 }
 0x285   :  { %390 = vmatprep.subr.mxu1 %v1526_v60 }
 0x286   :  { %391 = vmatpush1.msra.mxu1 %v1530_v61 }
 0x287   :  { %392 = vmatprep.subr.mxu1 %v1534_v62 }
 0x288   :  { %393 = vmatpush1.msra.mxu1 %v1538_v63 }
 0x289   :  { %394 = vmatprep.subr.mxu1 %v1542_v0 }
 0x28a   :  { %395 = vmatpush1.msra.mxu1 %v1546_v2 }
 0x28b   :  { %396 = vmatprep.subr.mxu1 %v1550_v3 }
 0x28c   :  { %397 = vmatpush1.msra.mxu1 %v1554_v4 }
 0x28d   :  { %398 = vmatprep.subr.mxu1 %v1558_v5 }
 0x28e   :  { %399 = vmatpush1.msra.mxu1 %v1562_v6 }
 0x28f   :  { %590 = vmatprep.subr.mxu1 %v1507_v54 }
 0x33f   :  { %v329_v16 = vpop.f32.mrf.mxu1 }
 0x340   :  { %v330_v18 = vadd.f32 %v329_v16, %v256_v15 }
 0x341   :  { %v331_v20 = vpop.f32.mrf.mxu1 }
 0x342   :  { %v334_v21 = vadd.f32 %v330_v18, %v1597_v14  ;;  %v332_v22 = vadd.f32 %v331_v20, %v257_v19 }
 0x344   :  { %v1200_v23 = vmul.f32 -1.442695, %v334_v21  ;;  %v335_v24 = vadd.f32 %v332_v22, %v1602_v17 }
 0x346   :  { %v1201_v25 = vmul.f32 -1.442695, %v335_v24  ;;  %1270 = vpow2.f32 %v1200_v23 }
 0x348   :  { %1272 = vpow2.f32 %v1201_v25 }
 0x353   :  { %v1271_v26 = vpop.eup %1270 }
 0x354   :  { %v342_v29 = vadd.f32 1.0, %v1271_v26 }
 0x355   :  { %v1273_v27 = vpop.eup %1272 }
 0x356   :  { %v343_v28 = vadd.f32 1.0, %v1273_v27 }
 0x358   :  { %1274 = vrcp.f32 %v343_v28 }
 0x359   :  { %1276 = vrcp.f32 %v342_v29 }
 0x365   :  { %v1275_v31 = vpop.eup %1274 }
 0x366   :  { %v348_v32 = vmul.f32 2.0, %v1275_v31  ;;  %v1277_v34 = vpop.eup %1276 }
 0x367   :  { %v350_v36 = vmul.f32 %v1277_v34, %v248_v9 }
 0x368   :  { %v1202_v33 = vadd.f32 -1.0, %v348_v32 }
 0x36a   :  { %v351_v35 = vmul.f32 %v1277_v34, %v1202_v33  ;;  %v468_v34 = vrot.slane %v1503_v43, 6 }
 0x36c   :  { %353 = vrot.lane.b32.xlu1 %v351_v35, %s1422_s2 }
 0x3de   :  { %v354_v39 = vpop.permute.xlu1 %353 }
 0x3df   :  { %v356_v41 = vadd.f32 %v354_v39, %v350_v36 }
 0x3e1   :  { %1278 = vtanh.f32 %v356_v41 }
 0x3ee   :  { %v1279_v42 = vpop.eup %1278 }
 0x3ef   :  { %v358_v44 = vmul.f32 %v1279_v42, %v1275_v31  ;;  %v467_v31 = vrot.slane %v1499_v40, 6 }
 0x3f1   :  { %360 = vrot.lane.b32.xlu0 %v358_v44, %s1422_s2 }
 0x3f5   :  { %63 = vperm.xlu0 %1259, %v56_v45  }
 0x463   :  { %v361_v46 = vpop.permute.xlu0 %360 }
 0x464   :  { %1203 = vmatmul.mubr.msk.f32.vlgmr.msra.gmra.mxu1 %vm260_vm3, %v361_v46 }
 0x465   :  { %591 = vmatpush1.msra.mxu1 %v1509_v55  ;;  %638 = vmatprep.mubr.f32.mxu1 %v1421_v1 }
 0x466   :  { %592 = vmatprep.subr.mxu1 %v1511_v56 }
 0x467   :  { %593 = vmatpush1.msra.mxu1 %v1514_v57 }
 0x468   :  { %594 = vmatprep.subr.mxu1 %v1518_v58 }
 0x469   :  { %595 = vmatpush1.msra.mxu1 %v1522_v59 }
 0x46a   :  { %596 = vmatprep.subr.mxu1 %v1526_v60 }
 0x46b   :  { %597 = vmatpush1.msra.mxu1 %v1530_v61 }
 0x46c   :  { %598 = vmatprep.subr.mxu1 %v1534_v62 }
 0x46d   :  { %599 = vmatpush1.msra.mxu1 %v1538_v63 }
 0x46e   :  { %600 = vmatprep.subr.mxu1 %v1542_v0 }
 0x46f   :  { %601 = vmatpush1.msra.mxu1 %v1546_v2 }
 0x470   :  { %v64_v47 = vpop.permute.xlu0 %63  ;;  %602 = vmatprep.subr.mxu1 %v1550_v3 }
 0x471   :  { %vm66_vm4 = vcmp.eq.s32.totalorder %v64_v47, %v1477_v30  ;;  %603 = vmatpush1.msra.mxu1 %v1554_v4  ;;  %v363_v30 = vrot.slane %v1503_v43, 4 }
 0x472   :  { %v1191_v48 = vsel %vm66_vm4, 1.0, %v1421_v1  ;;  %604 = vmatprep.subr.mxu1 %v1558_v5 }
 0x473   :  { %1195 = vmatmul.mubr.msk.f32.gmra.mxu0 %vm109_vm1, %v1191_v48  ;;  %605 = vmatpush1.msra.mxu1 %v1562_v6 }
 0x474   :  { %537 = vmatprep.mubr.f32.mxu0 %v1421_v1  ;;  %802 = vmatprep.subr.mxu1 %v1507_v54 }
 0x524   :  { %v434_v50 = vpop.f32.mrf.mxu1 }
 0x525   :  { %v435_v51 = vadd.f32 %v434_v50, %v362_v49 }
 0x526   :  { %v436_v52 = vpop.f32.mrf.mxu1 }
 0x527   :  { %v439_v53 = vadd.f32 %v435_v51, %v1597_v14  ;;  %v437_v7 = vadd.f32 %v436_v52, %v363_v30 }
 0x529   :  { %v1204_v8 = vmul.f32 -1.442695, %v439_v53  ;;  %v440_v9 = vadd.f32 %v437_v7, %v1602_v17 }
 0x52b   :  { %v1205_v10 = vmul.f32 -1.442695, %v440_v9  ;;  %1280 = vpow2.f32 %v1204_v8 }
 0x52d   :  { %1282 = vpow2.f32 %v1205_v10 }
 0x533   :  { %v195_v28 = vpop.f32.mrf.mxu0 }
 0x534   :  { %v1683_v10 = vadd.f32 %v195_v28, %v1492_v37 }
 0x535   :  { %v197_v29 = vpop.f32.mrf.mxu0 }
 0x538   :  { %v1281_v11 = vpop.eup %1280 }
 0x539   :  { %v447_v15 = vadd.f32 1.0, %v1281_v11 }
 0x53a   :  { %v1283_v12 = vpop.eup %1282 }
 0x53b   :  { %v448_v13 = vadd.f32 1.0, %v1283_v12  ;;  %v1686_v12 = vadd.f32 %v197_v29, %v1496_v38 }
 0x53d   :  { %1284 = vrcp.f32 %v448_v13 }
 0x53e   :  { %1286 = vrcp.f32 %v447_v15 }
 0x54a   :  { %v1285_v16 = vpop.eup %1284 }
 0x54b   :  { %v453_v18 = vmul.f32 2.0, %v1285_v16  ;;  %v1287_v20 = vpop.eup %1286 }
 0x54c   :  { %v455_v22 = vmul.f32 %v1287_v20, %v356_v41 }
 0x54d   :  { %v1206_v19 = vadd.f32 -1.0, %v453_v18 }
 0x54f   :  { %v456_v21 = vmul.f32 %v1287_v20, %v1206_v19 }
 0x551   :  { %458 = vrot.lane.b32.xlu1 %v456_v21, %s1422_s2 }
 0x5c3   :  { %v459_v23 = vpop.permute.xlu1 %458 }
 0x5c4   :  { %v461_v24 = vadd.f32 %v459_v23, %v455_v22 }
 0x5c6   :  { %1288 = vtanh.f32 %v461_v24 }
 0x5d3   :  { %v1289_v25 = vpop.eup %1288 }
 0x5d4   :  { %v463_v26 = vmul.f32 %v1289_v25, %v1285_v16 }
 0x5d6   :  { %465 = vrot.lane.b32.xlu1 %v463_v26, %s1422_s2 }
 0x648   :  { %v466_v27 = vpop.permute.xlu1 %465 }
 0x649   :  { %1207 = vmatmul.mubr.msk.f32.vlgmr.msra.gmra.mxu0 %vm260_vm3, %v466_v27 }
 0x64a   :  { %698 = vmatpush1.msra.mxu0 %v1509_v55  ;;  %745 = vmatprep.mubr.f32.mxu0 %v1421_v1 }
 0x64b   :  { %699 = vmatprep.subr.mxu0 %v1511_v56 }
 0x64c   :  { %700 = vmatpush1.msra.mxu0 %v1514_v57 }
 0x64d   :  { %701 = vmatprep.subr.mxu0 %v1518_v58 }
 0x64e   :  { %702 = vmatpush1.msra.mxu0 %v1522_v59 }
 0x64f   :  { %703 = vmatprep.subr.mxu0 %v1526_v60 }
 0x650   :  { %704 = vmatpush1.msra.mxu0 %v1530_v61 }
 0x651   :  { %705 = vmatprep.subr.mxu0 %v1534_v62 }
 0x652   :  { %706 = vmatpush1.msra.mxu0 %v1538_v63 }
 0x653   :  { %707 = vmatprep.subr.mxu0 %v1542_v0 }
 0x654   :  { %708 = vmatpush1.msra.mxu0 %v1546_v2 }
 0x655   :  { %709 = vmatprep.subr.mxu0 %v1550_v3 }
 0x656   :  { %710 = vmatpush1.msra.mxu0 %v1554_v4 }
 0x657   :  { %711 = vmatprep.subr.mxu0 %v1558_v5 }
 0x658   :  { %712 = vmatpush1.msra.mxu0 %v1562_v6 }
 0x659   :  { %907 = vmatprep.subr.mxu0 %v1507_v54 }
 0x709   :  { %v539_v32 = vpop.f32.mrf.mxu0 }
 0x70a   :  { %v540_v33 = vadd.f32 %v539_v32, %v467_v31 }
 0x70b   :  { %v541_v35 = vpop.f32.mrf.mxu0 }
 0x70c   :  { %v544_v36 = vadd.f32 %v540_v33, %v1597_v14  ;;  %v542_v39 = vadd.f32 %v541_v35, %v468_v34  ;;  %v675_v35 = vrot.slane %v1683_v10, 2 }
 0x70e   :  { %v1208_v41 = vmul.f32 -1.442695, %v544_v36  ;;  %v545_v42 = vadd.f32 %v542_v39, %v1602_v17 }
 0x710   :  { %v1209_v44 = vmul.f32 -1.442695, %v545_v42  ;;  %1290 = vpow2.f32 %v1208_v41  ;;  %v676_v41 = vrot.slane %v1686_v12, 2 }
 0x712   :  { %1292 = vpow2.f32 %v1209_v44 }
 0x71d   :  { %v1291_v45 = vpop.eup %1290 }
 0x71e   :  { %v552_v48 = vadd.f32 1.0, %v1291_v45 }
 0x71f   :  { %v1293_v46 = vpop.eup %1292 }
 0x720   :  { %v553_v47 = vadd.f32 1.0, %v1293_v46 }
 0x722   :  { %1294 = vrcp.f32 %v553_v47 }
 0x723   :  { %1296 = vrcp.f32 %v552_v48 }
 0x72f   :  { %v1295_v40 = vpop.eup %1294 }
 0x730   :  { %v558_v49 = vmul.f32 2.0, %v1295_v40  ;;  %v1297_v43 = vpop.eup %1296 }
 0x731   :  { %v560_v30 = vmul.f32 %v1297_v43, %v461_v24 }
 0x732   :  { %v1210_v50 = vadd.f32 -1.0, %v558_v49 }
 0x734   :  { %v561_v51 = vmul.f32 %v1297_v43, %v1210_v50 }
 0x736   :  { %563 = vrot.lane.b32.xlu0 %v561_v51, %s1422_s2 }
 0x7a8   :  { %v564_v52 = vpop.permute.xlu0 %563 }
 0x7a9   :  { %v566_v53 = vadd.f32 %v564_v52, %v560_v30 }
 0x7ab   :  { %1298 = vtanh.f32 %v566_v53 }
 0x7b8   :  { %v1299_v7 = vpop.eup %1298 }
 0x7b9   :  { %v568_v8 = vmul.f32 %v1299_v7, %v1295_v40 }
 0x7bb   :  { %570 = vrot.lane.b32.xlu1 %v568_v8, %s1422_s2 }
 0x82d   :  { %v571_v9 = vpop.permute.xlu1 %570 }
 0x82e   :  { %1211 = vmatmul.mubr.msk.f32.vlgmr.msra.gmra.mxu1 %vm260_vm3, %v571_v9 }
 0x82f   :  { %803 = vmatpush1.msra.mxu1 %v1509_v55  ;;  %850 = vmatprep.mubr.f32.mxu1 %v1421_v1 }
 0x830   :  { %804 = vmatprep.subr.mxu1 %v1511_v56 }
 0x831   :  { %805 = vmatpush1.msra.mxu1 %v1514_v57 }
 0x832   :  { %806 = vmatprep.subr.mxu1 %v1518_v58 }
 0x833   :  { %807 = vmatpush1.msra.mxu1 %v1522_v59 }
 0x834   :  { %808 = vmatprep.subr.mxu1 %v1526_v60 }
 0x835   :  { %809 = vmatpush1.msra.mxu1 %v1530_v61 }
 0x836   :  { %810 = vmatprep.subr.mxu1 %v1534_v62 }
 0x837   :  { %811 = vmatpush1.msra.mxu1 %v1538_v63 }
 0x838   :  { %812 = vmatprep.subr.mxu1 %v1542_v0 }
 0x839   :  { %813 = vmatpush1.msra.mxu1 %v1546_v2 }
 0x83a   :  { %814 = vmatprep.subr.mxu1 %v1550_v3 }
 0x83b   :  { %815 = vmatpush1.msra.mxu1 %v1554_v4 }
 0x83c   :  { %816 = vmatprep.subr.mxu1 %v1558_v5 }
 0x83d   :  { %817 = vmatpush1.msra.mxu1 %v1562_v6 }
 0x83e   :  { %1008 = vmatprep.subr.mxu1 %v1507_v54 }
 0x8ee   :  { %v640_v11 = vpop.f32.mrf.mxu1 }
 0x8ef   :  { %v641_v13 = vadd.f32 %v640_v11, %v1683_v10 }
 0x8f0   :  { %v642_v15 = vpop.f32.mrf.mxu1 }
 0x8f1   :  { %v645_v16 = vadd.f32 %v641_v13, %v1597_v14  ;;  %v643_v18 = vadd.f32 %v642_v15, %v1686_v12 }
 0x8f3   :  { %v1212_v19 = vmul.f32 -1.442695, %v645_v16  ;;  %v646_v20 = vadd.f32 %v643_v18, %v1602_v17 }
 0x8f5   :  { %v1213_v21 = vmul.f32 -1.442695, %v646_v20  ;;  %1300 = vpow2.f32 %v1212_v19 }
 0x8f7   :  { %1302 = vpow2.f32 %v1213_v21 }
 0x902   :  { %v1301_v54 = vpop.eup %1300 }
 0x903   :  { %v653_v23 = vadd.f32 1.0, %v1301_v54 }
 0x904   :  { %v1303_v37 = vpop.eup %1302 }
 0x905   :  { %v654_v22 = vadd.f32 1.0, %v1303_v37 }
 0x907   :  { %1304 = vrcp.f32 %v654_v22 }
 0x908   :  { %1306 = vrcp.f32 %v653_v23 }
 0x914   :  { %v1305_v38 = vpop.eup %1304 }
 0x915   :  { %v659_v24 = vmul.f32 2.0, %v1305_v38  ;;  %v1307_v26 = vpop.eup %1306 }
 0x916   :  { %v661_v28 = vmul.f32 %v1307_v26, %v566_v53 }
 0x917   :  { %v1214_v25 = vadd.f32 -1.0, %v659_v24 }
 0x919   :  { %v662_v27 = vmul.f32 %v1307_v26, %v1214_v25  ;;  %v885_v25 = vrot.slane %v1683_v10, 6 }
 0x91b   :  { %664 = vrot.lane.b32.xlu0 %v662_v27, %s1422_s2 }
 0x98d   :  { %v665_v29 = vpop.permute.xlu0 %664 }
 0x98e   :  { %v667_v31 = vadd.f32 %v665_v29, %v661_v28  ;;  %v886_v28 = vrot.slane %v1686_v12, 6 }
 0x990   :  { %1308 = vtanh.f32 %v667_v31 }
 0x99d   :  { %v1309_v32 = vpop.eup %1308 }
 0x99e   :  { %v669_v33 = vmul.f32 %v1309_v32, %v1305_v38 }
 0x9a0   :  { %671 = vrot.lane.b32.xlu1 %v669_v33, %s1422_s2 }
 0xa12   :  { %v672_v34 = vpop.permute.xlu1 %671 }
 0xa13   :  { %1215 = vmatmul.mubr.msk.f32.vlgmr.msra.gmra.mxu0 %vm260_vm3, %v672_v34 }
 0xa14   :  { %908 = vmatpush1.msra.mxu0 %v1509_v55  ;;  %955 = vmatprep.mubr.f32.mxu0 %v1421_v1 }
 0xa15   :  { %909 = vmatprep.subr.mxu0 %v1511_v56 }
 0xa16   :  { %910 = vmatpush1.msra.mxu0 %v1514_v57 }
 0xa17   :  { %911 = vmatprep.subr.mxu0 %v1518_v58 }
 0xa18   :  { %912 = vmatpush1.msra.mxu0 %v1522_v59 }
 0xa19   :  { %913 = vmatprep.subr.mxu0 %v1526_v60 }
 0xa1a   :  { %914 = vmatpush1.msra.mxu0 %v1530_v61 }
 0xa1b   :  { %915 = vmatprep.subr.mxu0 %v1534_v62 }
 0xa1c   :  { %916 = vmatpush1.msra.mxu0 %v1538_v63 }
 0xa1d   :  { %917 = vmatprep.subr.mxu0 %v1542_v0 }
 0xa1e   :  { %918 = vmatpush1.msra.mxu0 %v1546_v2 }
 0xa1f   :  { %919 = vmatprep.subr.mxu0 %v1550_v3 }
 0xa20   :  { %920 = vmatpush1.msra.mxu0 %v1554_v4 }
 0xa21   :  { %921 = vmatprep.subr.mxu0 %v1558_v5 }
 0xa22   :  { %922 = vmatpush1.msra.mxu0 %v1562_v6 }
 0xa23   :  { %1238 = vmatprep.subr.mxu0 %v1421_v1 }
 0xad3   :  { %v747_v36 = vpop.f32.mrf.mxu0 }
 0xad4   :  { %v748_v39 = vadd.f32 %v747_v36, %v675_v35 }
 0xad5   :  { %v749_v42 = vpop.f32.mrf.mxu0 }
 0xad6   :  { %v752_v44 = vadd.f32 %v748_v39, %v1597_v14  ;;  %v750_v45 = vadd.f32 %v749_v42, %v676_v41 }
 0xad8   :  { %v1216_v46 = vmul.f32 -1.442695, %v752_v44  ;;  %v753_v47 = vadd.f32 %v750_v45, %v1602_v17 }
 0xada   :  { %v1217_v48 = vmul.f32 -1.442695, %v753_v47  ;;  %1310 = vpow2.f32 %v1216_v46 }
 0xadc   :  { %1312 = vpow2.f32 %v1217_v48 }
 0xae7   :  { %v1311_v40 = vpop.eup %1310 }
 0xae8   :  { %v760_v43 = vadd.f32 1.0, %v1311_v40 }
 0xae9   :  { %v1313_v49 = vpop.eup %1312 }
 0xaea   :  { %v761_v50 = vadd.f32 1.0, %v1313_v49 }
 0xaec   :  { %1314 = vrcp.f32 %v761_v50 }
 0xaed   :  { %1316 = vrcp.f32 %v760_v43 }
 0xaf9   :  { %v1315_v51 = vpop.eup %1314 }
 0xafa   :  { %v766_v30 = vmul.f32 2.0, %v1315_v51  ;;  %v1317_v53 = vpop.eup %1316 }
 0xafb   :  { %v768_v8 = vmul.f32 %v1317_v53, %v667_v31 }
 0xafc   :  { %v1218_v52 = vadd.f32 -1.0, %v766_v30 }
 0xafe   :  { %v769_v7 = vmul.f32 %v1317_v53, %v1218_v52 }
 0xb00   :  { %771 = vrot.lane.b32.xlu0 %v769_v7, %s1422_s2 }
 0xb72   :  { %v772_v9 = vpop.permute.xlu0 %771 }
 0xb73   :  { %v774_v11 = vadd.f32 %v772_v9, %v768_v8 }
 0xb75   :  { %1318 = vtanh.f32 %v774_v11 }
 0xb82   :  { %v1319_v13 = vpop.eup %1318 }
 0xb83   :  { %v776_v15 = vmul.f32 %v1319_v13, %v1315_v51 }
 0xb85   :  { %778 = vrot.lane.b32.xlu1 %v776_v15, %s1422_s2 }
 0xbf7   :  { %v779_v16 = vpop.permute.xlu1 %778 }
 0xbf8   :  { %1219 = vmatmul.mubr.msk.f32.vlgmr.msra.gmra.mxu1 %vm260_vm3, %v779_v16 }
 0xbf9   :  { %1009 = vmatpush1.msra.mxu1 %v1509_v55  ;;  %1056 = vmatprep.mubr.f32.mxu1 %v1421_v1  ;;  %v780_v55 = vrot.slane %v1683_v10, 4 }
 0xbfa   :  { %1010 = vmatprep.subr.mxu1 %v1511_v56 }
 0xbfb   :  { %1011 = vmatpush1.msra.mxu1 %v1514_v57 }
 0xbfc   :  { %1012 = vmatprep.subr.mxu1 %v1518_v58  ;;  %v781_v58 = vrot.slane %v1686_v12, 4 }
 0xbfd   :  { %1013 = vmatpush1.msra.mxu1 %v1522_v59 }
 0xbfe   :  { %1014 = vmatprep.subr.mxu1 %v1526_v60 }
 0xbff   :  { %1015 = vmatpush1.msra.mxu1 %v1530_v61 }
 0xc00   :  { %1016 = vmatprep.subr.mxu1 %v1534_v62 }
 0xc01   :  { %1017 = vmatpush1.msra.mxu1 %v1538_v63 }
 0xc02   :  { %1018 = vmatprep.subr.mxu1 %v1542_v0 }
 0xc03   :  { %1019 = vmatpush1.msra.mxu1 %v1546_v2 }
 0xc04   :  { %1020 = vmatprep.subr.mxu1 %v1550_v3 }
 0xc05   :  { %1021 = vmatpush1.msra.mxu1 %v1554_v4 }
 0xc06   :  { %1022 = vmatprep.subr.mxu1 %v1558_v5 }
 0xc07   :  { %1023 = vmatpush1.msra.mxu1 %v1562_v6 }
 0xcb8   :  { %v852_v56 = vpop.f32.mrf.mxu1 }
 0xcb9   :  { %v853_v57 = vadd.f32 %v852_v56, %v780_v55 }
 0xcba   :  { %v854_v59 = vpop.f32.mrf.mxu1 }
 0xcbb   :  { %v857_v60 = vadd.f32 %v853_v57, %v1597_v14  ;;  %v855_v61 = vadd.f32 %v854_v59, %v781_v58  ;;  %v1087_v59 = vld [vmem:[%s1779_s5 + $0x8] sm:$0xff] }
 0xcbd   :  { %v1220_v62 = vmul.f32 -1.442695, %v857_v60  ;;  %v858_v63 = vadd.f32 %v855_v61, %v1602_v17  ;;  %v1086_v60 = vld [vmem:[%s1779_s5] sm:$0xff] }
 0xcbf   :  { %v1221_v0 = vmul.f32 -1.442695, %v858_v63  ;;  %1320 = vpow2.f32 %v1220_v62 }
 0xcc1   :  { %1322 = vpow2.f32 %v1221_v0 }
 0xccc   :  { %v1321_v2 = vpop.eup %1320 }
 0xccd   :  { %v865_v5 = vadd.f32 1.0, %v1321_v2 }
 0xcce   :  { %v1323_v3 = vpop.eup %1322 }
 0xccf   :  { %v866_v4 = vadd.f32 1.0, %v1323_v3 }
 0xcd1   :  { %1324 = vrcp.f32 %v866_v4  ;;  %v1231_v4 = vld [vmem:[%s1780_s6] ss:$0 sm:$0xff] }
 0xcd2   :  { %1326 = vrcp.f32 %v865_v5 }
 0xcde   :  { %v1325_v6 = vpop.eup %1324 }
 0xcdf   :  { %v871_v18 = vmul.f32 2.0, %v1325_v6  ;;  %v1327_v20 = vpop.eup %1326 }
 0xce0   :  { %v873_v54 = vmul.f32 %v1327_v20, %v774_v11 }
 0xce1   :  { %v1222_v19 = vadd.f32 -1.0, %v871_v18 }
 0xce3   :  { %v874_v21 = vmul.f32 %v1327_v20, %v1222_v19 }
 0xce5   :  { %876 = vrot.lane.b32.xlu0 %v874_v21, %s1422_s2 }
 0xd57   :  { %v877_v37 = vpop.permute.xlu0 %876 }
 0xd58   :  { %v879_v22 = vadd.f32 %v877_v37, %v873_v54 }
 0xd5a   :  { %1328 = vtanh.f32 %v879_v22 }
 0xd67   :  { %v1329_v23 = vpop.eup %1328 }
 0xd68   :  { %v881_v38 = vmul.f32 %v1329_v23, %v1325_v6 }
 0xd6a   :  { %883 = vrot.lane.b32.xlu1 %v881_v38, %s1422_s2 }
 0xddc   :  { %v884_v24 = vpop.permute.xlu1 %883 }
 0xddd   :  { %1223 = vmatmul.mubr.msk.f32.vlgmr.msra.gmra.mxu0 %vm260_vm3, %v884_v24 }
 0xdde   :  { %1246 = vmatprep.mubr.msk.f32.mxu0 %vm1423_vm5, %v1421_v1 }
 0xe9d   :  { %v957_v26 = vpop.f32.mrf.mxu0 }
 0xe9e   :  { %v958_v27 = vadd.f32 %v957_v26, %v885_v25 }
 0xe9f   :  { %v959_v29 = vpop.f32.mrf.mxu0 }
 0xea0   :  { %v962_v31 = vadd.f32 %v958_v27, %v1597_v14  ;;  %v960_v32 = vadd.f32 %v959_v29, %v886_v28 }
 0xea2   :  { %v1224_v33 = vmul.f32 -1.442695, %v962_v31  ;;  %v963_v34 = vadd.f32 %v960_v32, %v1602_v17 }
 0xea4   :  { %v1225_v35 = vmul.f32 -1.442695, %v963_v34  ;;  %1330 = vpow2.f32 %v1224_v33 }
 0xea6   :  { %1332 = vpow2.f32 %v1225_v35 }
 0xeb1   :  { %v1331_v36 = vpop.eup %1330 }
 0xeb2   :  { %v970_v42 = vadd.f32 1.0, %v1331_v36 }
 0xeb3   :  { %v1333_v39 = vpop.eup %1332 }
 0xeb4   :  { %v971_v41 = vadd.f32 1.0, %v1333_v39 }
 0xeb6   :  { %1334 = vrcp.f32 %v971_v41 }
 0xeb7   :  { %1336 = vrcp.f32 %v970_v42 }
 0xec3   :  { %v1335_v10 = vpop.eup %1334 }
 0xec4   :  { %v976_v44 = vmul.f32 2.0, %v1335_v10  ;;  %v1337_v12 = vpop.eup %1336 }
 0xec5   :  { %v978_v47 = vmul.f32 %v1337_v12, %v879_v22 }
 0xec6   :  { %v1226_v45 = vadd.f32 -1.0, %v976_v44 }
 0xec8   :  { %v979_v46 = vmul.f32 %v1337_v12, %v1226_v45 }
 0xeca   :  { %981 = vrot.lane.b32.xlu0 %v979_v46, %s1422_s2 }
 0xf3c   :  { %v982_v48 = vpop.permute.xlu0 %981 }
 0xf3d   :  { %v984_v40 = vadd.f32 %v982_v48, %v978_v47 }
 0xf3f   :  { %1338 = vtanh.f32 %v984_v40 }
 0xf4c   :  { %v1339_v49 = vpop.eup %1338 }
 0xf4d   :  { %v986_v50 = vmul.f32 %v1339_v49, %v1335_v10 }
 0xf4f   :  { %988 = vrot.lane.b32.xlu1 %v986_v50, %s1422_s2 }
 0xfc1   :  { %v989_v43 = vpop.permute.xlu1 %988 }
 0xfc2   :  { %1227 = vmatmul.mubr.msk.f32.vlgmr.msra.gmra.mxu1 %vm260_vm3, %v989_v43 }
0x1082   :  { %v1058_v51 = vpop.f32.mrf.mxu1 }
0x1083   :  { %v1059_v30 = vadd.f32 %v1058_v51, %v1597_v14  ;;  %v1089_v14 = vld [vmem:[%s1779_s5 + $0x18] sm:$0xff] }
0x1084   :  { %v1060_v52 = vpop.f32.mrf.mxu1  ;;  %1239 = vmatpush3.msra.mxu0 %v1089_v14 }
0x1085   :  { %v1228_v53 = vmul.f32 -1.442695, %v1059_v30  ;;  %v1061_v7 = vadd.f32 %v1060_v52, %v1602_v17  ;;  %v1088_v17 = vld [vmem:[%s1779_s5 + $0x10] sm:$0xff]  ;;  %1240 = vmatprep.subr.mxu0 %v1421_v1  ;;  %s1425_s5 = smov [#allocation7]  }
0x1086   :  { %1241 = vmatpush3.msra.mxu0 %v1088_v17  ;;  %s1180_s28 = sshll.u32 %s1425_s5, 4  ;;  %s1181_s28 = int_to_ptr.vmem [resolvable:$true] %s1180_s28 }
0x1087   :  { %v1229_v8 = vmul.f32 -1.442695, %v1061_v7  ;;  %1340 = vpow2.f32 %v1228_v53  ;;  %1242 = vmatprep.subr.mxu0 %v1421_v1  ;;  %s1390_s29 = scalar_lea.vmem %s1181_s28, 32  ;;  %p1395_p11 = scmp.lt.s32.totalorder %s1181_s28, %s1181_s28 }
0x1088   :  { %1243 = vmatpush3.msra.mxu0 %v1087_v59  ;;  %p1391_p10 = scmp.ne.s32.totalorder %s1181_s28, %s1390_s29  ;;  %p1396_p12 = scmp.lt.s32.totalorder %s1390_s29, %s1390_s29 }
0x1089   :  { %1342 = vpow2.f32 %v1229_v8  ;;  %1244 = vmatprep.subr.mxu0 %v1421_v1 }
0x108a   :  { %1245 = vmatpush3.msra.mxu0 %v1086_v60  ;;  %p1397_p13 = por %p1396_p12, %p1395_p11 }
0x108c   :  { %p1398_p0 = pnand %p1397_p13, %p1391_p10 }
0x1094   :  { %v1341_v9 = vpop.eup %1340 }
0x1095   :  { %v1069_v15 = vadd.f32 1.0, %v1341_v9 }
0x1096   :  { %v1343_v11 = vpop.eup %1342 }
0x1097   :  { %v1070_v13 = vadd.f32 1.0, %v1343_v11 }
0x1099   :  { %1344 = vrcp.f32 %v1070_v13 }
0x109a   :  { %1346 = vrcp.f32 %v1069_v15 }
0x10a6   :  { %v1345_v16 = vpop.eup %1344 }
0x10a7   :  { %v1075_v55 = vmul.f32 2.0, %v1345_v16  ;;  %v1347_v57 = vpop.eup %1346 }
0x10a8   :  { %v1077_v61 = vmul.f32 %v1347_v57, %v984_v40 }
0x10a9   :  { %v1230_v56 = vadd.f32 -1.0, %v1075_v55 }
0x10ab   :  { %v1078_v58 = vmul.f32 %v1347_v57, %v1230_v56 }
0x10ad   :  { %1080 = vrot.lane.b32.xlu0 %v1078_v58, %s1422_s2 }
0x111f   :  { %v1081_v62 = vpop.permute.xlu0 %1080 }
0x1120   :  { %v1083_v63 = vadd.f32 %v1081_v62, %v1077_v61 }
0x1122   :  { %1348 = vtanh.f32 %v1083_v63 }
0x112f   :  { %v1349_v0 = vpop.eup %1348 }
0x1130   :  { %v1085_v2 = vmul.f32 %v1349_v0, %v1345_v16 }
0x1132   :  { %1098 = vrot.lane.b32.xlu1 %v1085_v2, %s1424_s25 }
0x11a4   :  { %v1099_v3 = vpop.permute.xlu1 %1098 }
0x11a5   :  { %1247 = vmatmul.mubr.msk.f32.vlgmr.msra.gmra.mxu0 %vm1100_vm6, %v1099_v3 }
0x1265   :  { %v1169_v5 = vpop.f32.mrf.mxu0 }
0x1266   :  { %v1170_v1 = vadd.f32 %v1231_v4, %v1169_v5 }
0x1267   :  { %v1248_v6 = vpop.f32.mrf.mxu0 }
0x1268   :  { %1173 = vst [vmem:[#allocation7] sm:$0x3] %v1170_v1 }
0x1269   :  { %1401 = shalt.err (!%p1398_p0)
}
0x126a   :  { %1183 = dma.vmem_to_hbm [thread:$0]  %s1181_s28, 32, %s1781_s7, [#allocation4]  }
0x126b   :  { %1414 = dma.done.wait [#allocation4], 32  }
0x126c   :  { %1415 = vsyncadd [#allocation4], 4294967264 }
0x126d   :  { %1187 = vsyncpa [#allocation3], 1 }
0x126e   :  { %1188 = vsyncpa [#allocation6], 1 }
0x126f   :  { %1189 = vsyncpa [#allocation4], 1 }

</bundles_post_ra>
